<compile_context>
chip_gen: v7x
topology: tpu7x:2x2x1
jax: 0.10.0
libtpu: 0.0.40
codegen_flags: <defaults>
</compile_context>

<pallas_src>
import functools
import math

import jax
import jax.numpy as jnp
from jax.experimental import pallas as pl
from jax.experimental.pallas import tpu as pltpu

LANE = 128  # lane / last-dim multiple for vreg + MXU friendly layouts


def _round_up(n, m):
    return ((n + m - 1) // m) * m


def mlp_kernel(x_ref,
               w1_ref, b1_ref,
               w2_ref, b2_ref,
               w3_ref, b3_ref,
               w4_ref, b4_ref,
               out_ref):
    """One batch tile of the 4-layer MLP: 3x (Linear -> ReLU) -> Linear."""
    h = x_ref[...]  # bf16 [TILE_B, D0p]

    h = jnp.dot(h, w1_ref[...], preferred_element_type=jnp.float32) + b1_ref[...]
    h = jnp.maximum(h, 0.0).astype(jnp.bfloat16)

    h = jnp.dot(h, w2_ref[...], preferred_element_type=jnp.float32) + b2_ref[...]
    h = jnp.maximum(h, 0.0).astype(jnp.bfloat16)

    h = jnp.dot(h, w3_ref[...], preferred_element_type=jnp.float32) + b3_ref[...]
    h = jnp.maximum(h, 0.0).astype(jnp.bfloat16)

    logits = jnp.dot(h, w4_ref[...], preferred_element_type=jnp.float32) + b4_ref[...]
    out_ref[...] = logits.astype(out_ref.dtype)


@functools.partial(jax.jit, static_argnames=("tile_b",))
def mlp_forward(x, params, *, tile_b=128):
    """params: list of (W, b) with W of shape [in, out], b of shape [out]."""
    batch, input_dim = x.shape
    n_classes = params[-1][0].shape[1]

    # Logical and lane-padded feature dims per layer boundary.
    dims = [input_dim] + [w.shape[1] for w, _ in params]
    dims_p = [_round_up(d, LANE) for d in dims]
    b_pad = _round_up(max(batch, tile_b), tile_b)

    # Pad + cast operands. Zero padding is exact (see header comment).
    xp = jnp.zeros((b_pad, dims_p[0]), jnp.bfloat16)
    xp = xp.at[:batch, :input_dim].set(x.astype(jnp.bfloat16))

    flat = []
    for li, (w, b) in enumerate(params):
        din, dout = w.shape
        wp = jnp.zeros((dims_p[li], dims_p[li + 1]), jnp.bfloat16)
        wp = wp.at[:din, :dout].set(w.astype(jnp.bfloat16))
        bp = jnp.zeros((1, dims_p[li + 1]), jnp.float32).at[0, :dout].set(b)
        flat += [wp, bp]

    grid = (b_pad // tile_b,)

    # Activation tile walks the batch; weights/biases keep a constant block
    # index so they stay VMEM-resident across grid steps (no re-DMA).
    in_specs = [pl.BlockSpec((tile_b, dims_p[0]), lambda i: (i, 0))]
    for a in flat:
        in_specs.append(pl.BlockSpec(a.shape, lambda i: (0, 0)))
    out_specs = pl.BlockSpec((tile_b, dims_p[-1]), lambda i: (i, 0))

    flops = 2 * b_pad * sum(dims_p[i] * dims_p[i + 1] for i in range(4))
    bytes_accessed = (
        xp.size * xp.dtype.itemsize
        + sum(a.size * a.dtype.itemsize for a in flat)
        + b_pad * dims_p[-1] * 4
    )
    cost = pl.CostEstimate(flops=flops, transcendentals=0,
                           bytes_accessed=bytes_accessed)

    out_p = pl.pallas_call(
        mlp_kernel,
        out_shape=jax.ShapeDtypeStruct((b_pad, dims_p[-1]), jnp.float32),
        grid=grid,
        in_specs=in_specs,
        out_specs=out_specs,
        compiler_params=pltpu.CompilerParams(
            dimension_semantics=("parallel",)),
        cost_estimate=cost,
    )(xp, *flat)

    return out_p[:batch, :n_classes]


def init_mlp_params(key, input_dim, memory_dim, n_classes):
    """Deterministic init mirroring nn.Linear's default U(-1/sqrt(fan_in), +)."""
    hidden_dim1 = (input_dim + memory_dim) // 2
    hidden_dim2 = (memory_dim + n_classes) // 2
    dims = [input_dim, hidden_dim1, memory_dim, hidden_dim2, n_classes]

    params = []
    for i in range(4):
        fan_in, fan_out = dims[i], dims[i + 1]
        key, kw, kb = jax.random.split(key, 3)
        bound = 1.0 / math.sqrt(fan_in)
        # Stored as [in, out] (transpose of PyTorch's [out, in] storage).
        w = jax.random.uniform(kw, (fan_in, fan_out), jnp.float32, -bound, bound)
        b = jax.random.uniform(kb, (fan_out,), jnp.float32, -bound, bound)
        params.append((w, b))
    return params


def mlp_reference_f32(x, params):
    h = x
    for i, (w, b) in enumerate(params):
        h = h @ w + b
        if i < len(params) - 1:
            h = jnp.maximum(h, 0.0)
    return h


def mlp_reference_bf16(x, params):
    """Same bf16-operand / f32-accumulate recipe as the kernel."""
    h = x.astype(jnp.bfloat16)
    for i, (w, b) in enumerate(params):
        h = jnp.dot(h, w.astype(jnp.bfloat16),
                    preferred_element_type=jnp.float32) + b
        if i < len(params) - 1:
            h = jnp.maximum(h, 0.0).astype(jnp.bfloat16)
    return h


if __name__ == "__main__":
    input_dim = 32
    memory_dim = 16
    n_classes = 4
    batch = 8

    key = jax.random.PRNGKey(0)
    key, kx = jax.random.split(key)
    x = jax.random.normal(kx, (batch, input_dim), jnp.float32)
    params = init_mlp_params(key, input_dim, memory_dim, n_classes)

    logits = mlp_forward(x, params)
    jax.block_until_ready(logits)

    assert logits.shape == (batch, n_classes)

    ref_bf16 = mlp_reference_bf16(x, params)
    ref_f32 = mlp_reference_f32(x, params)
    assert jnp.allclose(logits, ref_bf16, atol=2e-3, rtol=2e-3), \
        "mismatch vs bf16 reference"
    assert jnp.allclose(logits, ref_f32, atol=5e-2, rtol=5e-2), \
        "mismatch vs f32 reference"

    print("KERNEL_OK")
</pallas_src>

<mosaic_0001>
module attributes {stable_mosaic.version = 11 : i64} {
  func.func @mlp_kernel(%arg0: i32, %arg1: memref<128x128xbf16, #tpu.memory_space<vmem>>, %arg2: memref<128x128xbf16, #tpu.memory_space<vmem>>, %arg3: memref<1x128xf32, #tpu.memory_space<vmem>>, %arg4: memref<128x128xbf16, #tpu.memory_space<vmem>>, %arg5: memref<1x128xf32, #tpu.memory_space<vmem>>, %arg6: memref<128x128xbf16, #tpu.memory_space<vmem>>, %arg7: memref<1x128xf32, #tpu.memory_space<vmem>>, %arg8: memref<128x128xbf16, #tpu.memory_space<vmem>>, %arg9: memref<1x128xf32, #tpu.memory_space<vmem>>, %arg10: memref<128x128xf32, #tpu.memory_space<vmem>>) attributes {dimension_semantics = [#tpu.dimension_semantics<parallel>], iteration_bounds = array<i64: 1>, scalar_prefetch = 0 : i64, scratch_operands = 0 : i64, tpu.core_type = #tpu.core_type<tc>, window_params = [{transform_indices = @transform_0, window_bounds = array<i64: 128, 128>}, {pipeline_mode = #tpu.pipeline_mode<synchronous>, transform_indices = @transform_1, window_bounds = array<i64: 128, 128>}, {pipeline_mode = #tpu.pipeline_mode<synchronous>, transform_indices = @transform_2, window_bounds = array<i64: 1, 128>}, {pipeline_mode = #tpu.pipeline_mode<synchronous>, transform_indices = @transform_3, window_bounds = array<i64: 128, 128>}, {pipeline_mode = #tpu.pipeline_mode<synchronous>, transform_indices = @transform_4, window_bounds = array<i64: 1, 128>}, {pipeline_mode = #tpu.pipeline_mode<synchronous>, transform_indices = @transform_5, window_bounds = array<i64: 128, 128>}, {pipeline_mode = #tpu.pipeline_mode<synchronous>, transform_indices = @transform_6, window_bounds = array<i64: 1, 128>}, {pipeline_mode = #tpu.pipeline_mode<synchronous>, transform_indices = @transform_7, window_bounds = array<i64: 128, 128>}, {pipeline_mode = #tpu.pipeline_mode<synchronous>, transform_indices = @transform_8, window_bounds = array<i64: 1, 128>}, {transform_indices = @transform_9, window_bounds = array<i64: 128, 128>}]} {
    %c0 = arith.constant 0 : index
    %c0_0 = arith.constant 0 : index
    %0 = vector.load %arg1[%c0, %c0_0] : memref<128x128xbf16, #tpu.memory_space<vmem>>, vector<128x128xbf16>
    %c0_1 = arith.constant 0 : index
    %c0_2 = arith.constant 0 : index
    %1 = vector.load %arg2[%c0_1, %c0_2] : memref<128x128xbf16, #tpu.memory_space<vmem>>, vector<128x128xbf16>
    %cst = arith.constant dense<0.000000e+00> : vector<128x128xf32>
    %2 = tpu.matmul %0, %1, %cst {dimension_numbers = #tpu.dot_dimension_numbers<[1], [0], [0], [1], [0, 0, 1, 1], [], []>} : vector<128x128xbf16>, vector<128x128xbf16>, vector<128x128xf32> -> vector<128x128xf32>
    %c0_3 = arith.constant 0 : index
    %c0_4 = arith.constant 0 : index
    %3 = vector.load %arg3[%c0_3, %c0_4] : memref<1x128xf32, #tpu.memory_space<vmem>>, vector<1x128xf32>
    %4 = vector.broadcast %3 : vector<1x128xf32> to vector<128x128xf32>
    %5 = arith.addf %2, %4 : vector<128x128xf32>
    %cst_5 = arith.constant 0.000000e+00 : f32
    %6 = vector.broadcast %cst_5 : f32 to vector<128x128xf32>
    %7 = arith.maximumf %5, %6 : vector<128x128xf32>
    %8 = arith.truncf %7 : vector<128x128xf32> to vector<128x128xbf16>
    %c0_6 = arith.constant 0 : index
    %c0_7 = arith.constant 0 : index
    %9 = vector.load %arg4[%c0_6, %c0_7] : memref<128x128xbf16, #tpu.memory_space<vmem>>, vector<128x128xbf16>
    %cst_8 = arith.constant dense<0.000000e+00> : vector<128x128xf32>
    %10 = tpu.matmul %8, %9, %cst_8 {dimension_numbers = #tpu.dot_dimension_numbers<[1], [0], [0], [1], [0, 0, 1, 1], [], []>} : vector<128x128xbf16>, vector<128x128xbf16>, vector<128x128xf32> -> vector<128x128xf32>
    %c0_9 = arith.constant 0 : index
    %c0_10 = arith.constant 0 : index
    %11 = vector.load %arg5[%c0_9, %c0_10] : memref<1x128xf32, #tpu.memory_space<vmem>>, vector<1x128xf32>
    %12 = vector.broadcast %11 : vector<1x128xf32> to vector<128x128xf32>
    %13 = arith.addf %10, %12 : vector<128x128xf32>
    %cst_11 = arith.constant 0.000000e+00 : f32
    %14 = vector.broadcast %cst_11 : f32 to vector<128x128xf32>
    %15 = arith.maximumf %13, %14 : vector<128x128xf32>
    %16 = arith.truncf %15 : vector<128x128xf32> to vector<128x128xbf16>
    %c0_12 = arith.constant 0 : index
    %c0_13 = arith.constant 0 : index
    %17 = vector.load %arg6[%c0_12, %c0_13] : memref<128x128xbf16, #tpu.memory_space<vmem>>, vector<128x128xbf16>
    %cst_14 = arith.constant dense<0.000000e+00> : vector<128x128xf32>
    %18 = tpu.matmul %16, %17, %cst_14 {dimension_numbers = #tpu.dot_dimension_numbers<[1], [0], [0], [1], [0, 0, 1, 1], [], []>} : vector<128x128xbf16>, vector<128x128xbf16>, vector<128x128xf32> -> vector<128x128xf32>
    %c0_15 = arith.constant 0 : index
    %c0_16 = arith.constant 0 : index
    %19 = vector.load %arg7[%c0_15, %c0_16] : memref<1x128xf32, #tpu.memory_space<vmem>>, vector<1x128xf32>
    %20 = vector.broadcast %19 : vector<1x128xf32> to vector<128x128xf32>
    %21 = arith.addf %18, %20 : vector<128x128xf32>
    %cst_17 = arith.constant 0.000000e+00 : f32
    %22 = vector.broadcast %cst_17 : f32 to vector<128x128xf32>
    %23 = arith.maximumf %21, %22 : vector<128x128xf32>
    %24 = arith.truncf %23 : vector<128x128xf32> to vector<128x128xbf16>
    %c0_18 = arith.constant 0 : index
    %c0_19 = arith.constant 0 : index
    %25 = vector.load %arg8[%c0_18, %c0_19] : memref<128x128xbf16, #tpu.memory_space<vmem>>, vector<128x128xbf16>
    %cst_20 = arith.constant dense<0.000000e+00> : vector<128x128xf32>
    %26 = tpu.matmul %24, %25, %cst_20 {dimension_numbers = #tpu.dot_dimension_numbers<[1], [0], [0], [1], [0, 0, 1, 1], [], []>} : vector<128x128xbf16>, vector<128x128xbf16>, vector<128x128xf32> -> vector<128x128xf32>
    %c0_21 = arith.constant 0 : index
    %c0_22 = arith.constant 0 : index
    %27 = vector.load %arg9[%c0_21, %c0_22] : memref<1x128xf32, #tpu.memory_space<vmem>>, vector<1x128xf32>
    %28 = vector.broadcast %27 : vector<1x128xf32> to vector<128x128xf32>
    %29 = arith.addf %26, %28 : vector<128x128xf32>
    %c0_23 = arith.constant 0 : index
    %c0_24 = arith.constant 0 : index
    %30 = vector.load %arg10[%c0_23, %c0_24] : memref<128x128xf32, #tpu.memory_space<vmem>>, vector<128x128xf32>
    tpu.vector_store %arg10[%c0_23, %c0_24], %29 {strides = array<i32>} : memref<128x128xf32, #tpu.memory_space<vmem>>, vector<128x128xf32>,
    return
  }
  func.func @transform_0(%arg0: i32) -> (i32, i32) {
    %c0_i32 = arith.constant 0 : i32
    %c0_i32_0 = arith.constant 0 : i32
    return %arg0, %c0_i32 : i32, i32
  }
  func.func @transform_1(%arg0: i32) -> (i32, i32) {
    %c0_i32 = arith.constant 0 : i32
    %c0_i32_0 = arith.constant 0 : i32
    %c0_i32_1 = arith.constant 0 : i32
    return %c0_i32, %c0_i32_0 : i32, i32
  }
  func.func @transform_2(%arg0: i32) -> (i32, i32) {
    %c0_i32 = arith.constant 0 : i32
    %c0_i32_0 = arith.constant 0 : i32
    %c0_i32_1 = arith.constant 0 : i32
    return %c0_i32, %c0_i32_0 : i32, i32
  }
  func.func @transform_3(%arg0: i32) -> (i32, i32) {
    %c0_i32 = arith.constant 0 : i32
    %c0_i32_0 = arith.constant 0 : i32
    %c0_i32_1 = arith.constant 0 : i32
    return %c0_i32, %c0_i32_0 : i32, i32
  }
  func.func @transform_4(%arg0: i32) -> (i32, i32) {
    %c0_i32 = arith.constant 0 : i32
    %c0_i32_0 = arith.constant 0 : i32
    %c0_i32_1 = arith.constant 0 : i32
    return %c0_i32, %c0_i32_0 : i32, i32
  }
  func.func @transform_5(%arg0: i32) -> (i32, i32) {
    %c0_i32 = arith.constant 0 : i32
    %c0_i32_0 = arith.constant 0 : i32
    %c0_i32_1 = arith.constant 0 : i32
    return %c0_i32, %c0_i32_0 : i32, i32
  }
  func.func @transform_6(%arg0: i32) -> (i32, i32) {
    %c0_i32 = arith.constant 0 : i32
    %c0_i32_0 = arith.constant 0 : i32
    %c0_i32_1 = arith.constant 0 : i32
    return %c0_i32, %c0_i32_0 : i32, i32
  }
  func.func @transform_7(%arg0: i32) -> (i32, i32) {
    %c0_i32 = arith.constant 0 : i32
    %c0_i32_0 = arith.constant 0 : i32
    %c0_i32_1 = arith.constant 0 : i32
    return %c0_i32, %c0_i32_0 : i32, i32
  }
  func.func @transform_8(%arg0: i32) -> (i32, i32) {
    %c0_i32 = arith.constant 0 : i32
    %c0_i32_0 = arith.constant 0 : i32
    %c0_i32_1 = arith.constant 0 : i32
    return %c0_i32, %c0_i32_0 : i32, i32
  }
  func.func @transform_9(%arg0: i32) -> (i32, i32) {
    %c0_i32 = arith.constant 0 : i32
    %c0_i32_0 = arith.constant 0 : i32
    return %arg0, %c0_i32 : i32, i32
  }
}

</mosaic_0001>

<bundles_post_ra>
// kernel: mlp_forward.1
= control target key start
LH: loop header
LB: loop body
LE: loop exit
PB: predicated region body
PF: predicated region fallthrough
CT: control target
= control target key end

     0   :  { %s1367_s1 = inlined_call_operand.vmem [shape: bf16[128,128], index: 1, kind: input, shape index: {}]   ;;  %s1368_s0 = inlined_call_operand.vmem [shape: bf16[128,128], index: 0, kind: input, shape index: {}]   ;;  %s1369_s3 = inlined_call_operand.vmem [shape: bf16[128,128], index: 3, kind: input, shape index: {}]   ;;  %s1370_s5 = inlined_call_operand.vmem [shape: bf16[128,128], index: 5, kind: input, shape index: {}]   ;;  %s1371_s2 = inlined_call_operand.vmem [shape: f32[1,128], index: 2, kind: input, shape index: {}]   ;;  %s1372_s7 = inlined_call_operand.vmem [shape: bf16[128,128], index: 7, kind: input, shape index: {}]   ;;  %s1373_s4 = inlined_call_operand.vmem [shape: f32[1,128], index: 4, kind: input, shape index: {}]   ;;  %s1374_s6 = inlined_call_operand.vmem [shape: f32[1,128], index: 6, kind: input, shape index: {}]   ;;  %s1375_s8 = inlined_call_operand.vmem [shape: f32[1,128], index: 8, kind: input, shape index: {}]   ;;  %s1376_s9 = inlined_call_operand.vmem [shape: f32[128,128], index: 9, kind: output, shape index: {}]  }
   0x1   :  { %v1097_v0 = vld [vmem:[%s1367_s1] sm:$0xff]   ;;  %v1098_v1 = vld [vmem:[%s1367_s1 + $0x8] sm:$0xff]   ;;  %v1099_v2 = vld [vmem:[%s1367_s1 + $0x10] sm:$0xff]  }
   0x2   :  { %969 = vmatprep.subr.bf16.mxu0 %v1097_v0  ;;  %v1100_v3 = vld [vmem:[%s1367_s1 + $0x18] sm:$0xff]   ;;  %v1105_v4 = vld [vmem:[%s1368_s0] sm:$0xff]   ;;  %v1102_v6 = vld [vmem:[%s1367_s1 + $0x28] sm:$0xff]  }
   0x3   :  { %970 = vmatpush3.bf16.msra.mxu0 %v1097_v0  ;;  %985 = vmatprep.mubr.bf16.mxu0 %v1105_v4  ;;  %v1101_v5 = vld [vmem:[%s1367_s1 + $0x20] sm:$0xff]   ;;  %v1114_v8 = vld [vmem:[%s1369_s3 + $0x8] sm:$0xff]   ;;  %v1103_v9 = vld [vmem:[%s1367_s1 + $0x30] sm:$0xff]  }
   0x4   :  { %971 = vmatprep.subr.bf16.mxu0 %v1098_v1  ;;  %v1113_v7 = vld [vmem:[%s1369_s3] sm:$0xff]   ;;  %v1115_v10 = vld [vmem:[%s1369_s3 + $0x10] sm:$0xff]   ;;  %v1104_v11 = vld [vmem:[%s1367_s1 + $0x38] sm:$0xff]  }
   0x5   :  { %1001 = vmatprep.subr.bf16.mxu1 %v1113_v7  ;;  %v1116_v12 = vld [vmem:[%s1369_s3 + $0x18] sm:$0xff]   ;;  %v1117_v13 = vld [vmem:[%s1369_s3 + $0x20] sm:$0xff]   ;;  %v1106_v14 = vld [vmem:[%s1368_s0 + $0x8] sm:$0xff]  }
   0x6   :  { %1002 = vmatpush3.bf16.msra.mxu1 %v1113_v7  ;;  %v1107_v15 = vld [vmem:[%s1368_s0 + $0x10] sm:$0xff]   ;;  %v1118_v16 = vld [vmem:[%s1369_s3 + $0x28] sm:$0xff]   ;;  %v1108_v17 = vld [vmem:[%s1368_s0 + $0x18] sm:$0xff]  }
   0x7   :  { %972 = vmatpush3.bf16.msra.mxu0 %v1098_v1  ;;  %1003 = vmatprep.subr.bf16.mxu1 %v1114_v8  ;;  %v1109_v18 = vld [vmem:[%s1368_s0 + $0x20] sm:$0xff]   ;;  %v1110_v19 = vld [vmem:[%s1368_s0 + $0x28] sm:$0xff]   ;;  %v1111_v20 = vld [vmem:[%s1368_s0 + $0x30] sm:$0xff]  }
   0x8   :  { %973 = vmatprep.subr.bf16.mxu0 %v1099_v2  ;;  %v1112_v21 = vld [vmem:[%s1368_s0 + $0x38] sm:$0xff]   ;;  %v1119_v22 = vld [vmem:[%s1369_s3 + $0x30] sm:$0xff]   ;;  %v1121_v24 = vld [vmem:[%s1370_s5] sm:$0xff]  }
   0x9   :  { %v1120_v23 = vld [vmem:[%s1369_s3 + $0x38] sm:$0xff]   ;;  %v1122_v25 = vld [vmem:[%s1370_s5 + $0x8] sm:$0xff]   ;;  %v1123_v26 = vld [vmem:[%s1370_s5 + $0x10] sm:$0xff]  }
   0xa   :  { %1004 = vmatpush3.bf16.msra.mxu1 %v1114_v8  ;;  %v1124_v27 = vld [vmem:[%s1370_s5 + $0x18] sm:$0xff]   ;;  %v1125_v28 = vld [vmem:[%s1370_s5 + $0x20] sm:$0xff]   ;;  %v1126_v29 = vld [vmem:[%s1370_s5 + $0x28] sm:$0xff]  }
   0xb   :  { %974 = vmatpush3.bf16.msra.mxu0 %v1099_v2  ;;  %1005 = vmatprep.subr.bf16.mxu1 %v1115_v10  ;;  %v861_v30 = vld [vmem:[%s1371_s2] ss:$0 sm:$0xff] }
   0xc   :  { %975 = vmatprep.subr.bf16.mxu0 %v1100_v3 }
   0xe   :  { %1006 = vmatpush3.bf16.msra.mxu1 %v1115_v10 }
   0xf   :  { %976 = vmatpush3.bf16.msra.mxu0 %v1100_v3  ;;  %1007 = vmatprep.subr.bf16.mxu1 %v1116_v12 }
  0x10   :  { %977 = vmatprep.subr.bf16.mxu0 %v1101_v5 }
  0x12   :  { %1008 = vmatpush3.bf16.msra.mxu1 %v1116_v12 }
  0x13   :  { %978 = vmatpush3.bf16.msra.mxu0 %v1101_v5  ;;  %1009 = vmatprep.subr.bf16.mxu1 %v1117_v13 }
  0x14   :  { %979 = vmatprep.subr.bf16.mxu0 %v1102_v6 }
  0x16   :  { %1010 = vmatpush3.bf16.msra.mxu1 %v1117_v13 }
  0x17   :  { %980 = vmatpush3.bf16.msra.mxu0 %v1102_v6  ;;  %1011 = vmatprep.subr.bf16.mxu1 %v1118_v16 }
  0x18   :  { %981 = vmatprep.subr.bf16.mxu0 %v1103_v9 }
  0x1a   :  { %1012 = vmatpush3.bf16.msra.mxu1 %v1118_v16 }
  0x1b   :  { %982 = vmatpush3.bf16.msra.mxu0 %v1103_v9  ;;  %1013 = vmatprep.subr.bf16.mxu1 %v1119_v22 }
  0x1c   :  { %983 = vmatprep.subr.bf16.mxu0 %v1104_v11 }
  0x1e   :  { %1014 = vmatpush3.bf16.msra.mxu1 %v1119_v22 }
  0x1f   :  { %984 = vmatpush3.bf16.msra.mxu0 %v1104_v11  ;;  %1015 = vmatprep.subr.bf16.mxu1 %v1120_v23 }
  0x20   :  { %1033 = vmatprep.subr.bf16.mxu0 %v1121_v24 }
  0x22   :  { %986 = vmatmul.mubr.bf16.vlgmr.msra.gmra.mrb[0].mxu0 %v1106_v14  ;;  %1016 = vmatpush3.bf16.msra.mxu1 %v1120_v23  ;;  %v1127_v23 = vld [vmem:[%s1370_s5 + $0x30] sm:$0xff]  }
  0x23   :  { %989 = vmatprep.mubr.bf16.mxu0 %v1107_v15  ;;  %1034 = vmatpush3.bf16.msra.mxu0 %v1121_v24  ;;  %v1128_v24 = vld [vmem:[%s1370_s5 + $0x38] sm:$0xff]  }
  0x24   :  { %1035 = vmatprep.subr.bf16.mxu0 %v1122_v25 }
  0x27   :  { %1036 = vmatpush3.bf16.msra.mxu0 %v1122_v25  ;;  %v1129_v25 = vld [vmem:[%s1372_s7] sm:$0xff]  }
  0x28   :  { %1037 = vmatprep.subr.bf16.mxu0 %v1123_v26  ;;  %1065 = vmatprep.subr.bf16.mxu1 %v1129_v25 }
  0x2a   :  { %990 = vmatmul.mubr.bf16.gmra.mrb[4].mxu0 %v1108_v17 }
  0x2b   :  { %993 = vmatprep.mubr.bf16.mxu0 %v1109_v18  ;;  %1038 = vmatpush3.bf16.msra.mxu0 %v1123_v26  ;;  %v1130_v26 = vld [vmem:[%s1372_s7 + $0x8] sm:$0xff]  }
  0x2c   :  { %1039 = vmatprep.subr.bf16.mxu0 %v1124_v27 }
  0x2f   :  { %1040 = vmatpush3.bf16.msra.mxu0 %v1124_v27  ;;  %v1131_v27 = vld [vmem:[%s1372_s7 + $0x10] sm:$0xff]  }
  0x30   :  { %1041 = vmatprep.subr.bf16.mxu0 %v1125_v28 }
  0x32   :  { %994 = vmatmul.mubr.bf16.gmra.mrb[8].mxu0 %v1110_v19 }
  0x33   :  { %997 = vmatprep.mubr.bf16.mxu0 %v1111_v20  ;;  %1042 = vmatpush3.bf16.msra.mxu0 %v1125_v28  ;;  %v1132_v28 = vld [vmem:[%s1372_s7 + $0x18] sm:$0xff]  }
  0x34   :  { %1043 = vmatprep.subr.bf16.mxu0 %v1126_v29 }
  0x37   :  { %1044 = vmatpush3.bf16.msra.mxu0 %v1126_v29  ;;  %v1133_v29 = vld [vmem:[%s1372_s7 + $0x20] sm:$0xff]  }
  0x38   :  { %1045 = vmatprep.subr.bf16.mxu0 %v1127_v23 }
  0x3a   :  { %998 = vmatmul.mubr.bf16.gmra.mrb[12].mxu0 %v1112_v21 }
  0x3b   :  { %1046 = vmatpush3.bf16.msra.mxu0 %v1127_v23 }
  0x3c   :  { %1047 = vmatprep.subr.bf16.mxu0 %v1128_v24 }
  0x3f   :  { %1048 = vmatpush3.bf16.msra.mxu0 %v1128_v24  ;;  %v1135_v24 = vld [vmem:[%s1372_s7 + $0x30] sm:$0xff]  }
  0xf5   :  { %v987_v31 = vpop.f32.mrb[0].mxu0 }
  0xf6   :  { %v211_v32 = vadd.f32 %v987_v31, %v861_v30  ;;  %v202_v33 = vpop.f32.mrb[1].mxu0  ;;  %v878_v31 = vld [vmem:[%s1373_s4] ss:$0 sm:$0xff] }
  0xf7   :  { %v203_v34 = vadd.f32 %v861_v30, %v202_v33  ;;  %v988_v35 = vpop.f32.mrb[2].mxu0 }
  0xf8   :  { %v214_v36 = vadd.f32 %v988_v35, %v861_v30  ;;  %v205_v37 = vpop.f32.mrb[3].mxu0  ;;  %v267_v39 = vmax.f32 %v211_v32, 0.0 }
  0xf9   :  { %v206_v38 = vadd.f32 %v861_v30, %v205_v37  ;;  %v265_v41 = vmax.f32 %v203_v34, 0.0 }
  0xfa   :  { %v268_v40 = vmax.f32 %v214_v36, 0.0 }
  0xfb   :  { %v266_v42 = vmax.f32 %v206_v38, 0.0 }
  0xfc   :  { %v282_v43 = vpack.c.bf16 %v268_v40, %v267_v39 }
  0xfd   :  { %v991_v44 = vpop.f32.mrb[4].mxu0  ;;  %v281_v45 = vpack.c.bf16 %v266_v42, %v265_v41 }
  0xfe   :  { %v227_v46 = vadd.f32 %v991_v44, %v861_v30  ;;  %v218_v47 = vpop.f32.mrb[5].mxu0 }
  0xff   :  { %v219_v48 = vadd.f32 %v861_v30, %v218_v47  ;;  %v992_v49 = vpop.f32.mrb[6].mxu0  ;;  %1017 = vmatprep.mubr.bf16.mxu1 %v281_v45 }
 0x100   :  { %v230_v50 = vadd.f32 %v992_v49, %v861_v30  ;;  %v221_v51 = vpop.f32.mrb[7].mxu0  ;;  %1018 = vmatmul.mubr.bf16.vlgmr.msra.gmra.mrb[0].mxu1 %v282_v43  ;;  %v271_v53 = vmax.f32 %v227_v46, 0.0 }
 0x101   :  { %v222_v52 = vadd.f32 %v861_v30, %v221_v51  ;;  %v269_v55 = vmax.f32 %v219_v48, 0.0  ;;  %1066 = vmatpush3.bf16.msra.mxu1 %v1129_v25  ;;  %v1136_v25 = vld [vmem:[%s1372_s7 + $0x38] sm:$0xff]  }
 0x102   :  { %v272_v54 = vmax.f32 %v230_v50, 0.0  ;;  %1067 = vmatprep.subr.bf16.mxu1 %v1130_v26 }
 0x103   :  { %v270_v56 = vmax.f32 %v222_v52, 0.0 }
 0x104   :  { %v284_v57 = vpack.c.bf16 %v272_v54, %v271_v53 }
 0x105   :  { %v283_v58 = vpack.c.bf16 %v270_v56, %v269_v55  ;;  %v995_v59 = vpop.f32.mrb[8].mxu0  ;;  %1068 = vmatpush3.bf16.msra.mxu1 %v1130_v26  ;;  %v887_v26 = vld [vmem:[%s1374_s6] ss:$0 sm:$0xff] }
 0x106   :  { %v243_v60 = vadd.f32 %v995_v59, %v861_v30  ;;  %v234_v61 = vpop.f32.mrb[9].mxu0  ;;  %1069 = vmatprep.subr.bf16.mxu1 %v1131_v27 }
 0x107   :  { %v235_v62 = vadd.f32 %v861_v30, %v234_v61  ;;  %v996_v63 = vpop.f32.mrb[10].mxu0  ;;  %1021 = vmatprep.mubr.bf16.mxu1 %v283_v58 }
 0x108   :  { %v246_v0 = vadd.f32 %v996_v63, %v861_v30  ;;  %v237_v1 = vpop.f32.mrb[11].mxu0  ;;  %1022 = vmatmul.mubr.bf16.gmra.mrb[4].mxu1 %v284_v57  ;;  %v275_v3 = vmax.f32 %v243_v60, 0.0 }
 0x109   :  { %v238_v2 = vadd.f32 %v861_v30, %v237_v1  ;;  %v273_v5 = vmax.f32 %v235_v62, 0.0  ;;  %1070 = vmatpush3.bf16.msra.mxu1 %v1131_v27 }
 0x10a   :  { %v276_v4 = vmax.f32 %v246_v0, 0.0  ;;  %1071 = vmatprep.subr.bf16.mxu1 %v1132_v28 }
 0x10b   :  { %v274_v6 = vmax.f32 %v238_v2, 0.0 }
 0x10c   :  { %v286_v7 = vpack.c.bf16 %v276_v4, %v275_v3 }
 0x10d   :  { %v285_v8 = vpack.c.bf16 %v274_v6, %v273_v5  ;;  %v999_v9 = vpop.f32.mrb[12].mxu0  ;;  %1072 = vmatpush3.bf16.msra.mxu1 %v1132_v28 }
 0x10e   :  { %v259_v10 = vadd.f32 %v999_v9, %v861_v30  ;;  %v250_v11 = vpop.f32.mrb[13].mxu0  ;;  %1073 = vmatprep.subr.bf16.mxu1 %v1133_v29 }
 0x10f   :  { %v251_v12 = vadd.f32 %v861_v30, %v250_v11  ;;  %v1000_v13 = vpop.f32.mrb[14].mxu0  ;;  %1025 = vmatprep.mubr.bf16.mxu1 %v285_v8 }
 0x110   :  { %v262_v14 = vadd.f32 %v1000_v13, %v861_v30  ;;  %v253_v15 = vpop.f32.mrb[15].mxu0  ;;  %1026 = vmatmul.mubr.bf16.gmra.mrb[8].mxu1 %v286_v7  ;;  %v279_v17 = vmax.f32 %v259_v10, 0.0 }
 0x111   :  { %v254_v16 = vadd.f32 %v861_v30, %v253_v15  ;;  %v277_v19 = vmax.f32 %v251_v12, 0.0  ;;  %v1134_v30 = vld [vmem:[%s1372_s7 + $0x28] sm:$0xff]   ;;  %1074 = vmatpush3.bf16.msra.mxu1 %v1133_v29 }
 0x112   :  { %v280_v18 = vmax.f32 %v262_v14, 0.0  ;;  %1075 = vmatprep.subr.bf16.mxu1 %v1134_v30 }
 0x113   :  { %v278_v20 = vmax.f32 %v254_v16, 0.0 }
 0x114   :  { %v288_v21 = vpack.c.bf16 %v280_v18, %v279_v17 }
 0x115   :  { %v287_v22 = vpack.c.bf16 %v278_v20, %v277_v19  ;;  %1076 = vmatpush3.bf16.msra.mxu1 %v1134_v30 }
 0x116   :  { %1077 = vmatprep.subr.bf16.mxu1 %v1135_v24 }
 0x117   :  { %1029 = vmatprep.mubr.bf16.mxu1 %v287_v22 }
 0x118   :  { %1030 = vmatmul.mubr.bf16.gmra.mrb[12].mxu1 %v288_v21 }
 0x119   :  { %1078 = vmatpush3.bf16.msra.mxu1 %v1135_v24 }
 0x11a   :  { %1079 = vmatprep.subr.bf16.mxu1 %v1136_v25 }
 0x11d   :  { %1080 = vmatpush3.bf16.msra.mxu1 %v1136_v25 }
 0x1d3   :  { %v1019_v32 = vpop.f32.mrb[0].mxu1 }
 0x1d4   :  { %v403_v33 = vadd.f32 %v1019_v32, %v878_v31  ;;  %v394_v34 = vpop.f32.mrb[1].mxu1 }
 0x1d5   :  { %v395_v35 = vadd.f32 %v878_v31, %v394_v34  ;;  %v1020_v36 = vpop.f32.mrb[2].mxu1 }
 0x1d6   :  { %v406_v37 = vadd.f32 %v1020_v36, %v878_v31  ;;  %v397_v38 = vpop.f32.mrb[3].mxu1  ;;  %v459_v40 = vmax.f32 %v403_v33, 0.0 }
 0x1d7   :  { %v398_v39 = vadd.f32 %v878_v31, %v397_v38  ;;  %v457_v42 = vmax.f32 %v395_v35, 0.0 }
 0x1d8   :  { %v460_v41 = vmax.f32 %v406_v37, 0.0 }
 0x1d9   :  { %v458_v43 = vmax.f32 %v398_v39, 0.0 }
 0x1da   :  { %v474_v44 = vpack.c.bf16 %v460_v41, %v459_v40 }
 0x1db   :  { %v473_v45 = vpack.c.bf16 %v458_v43, %v457_v42  ;;  %v1023_v46 = vpop.f32.mrb[4].mxu1 }
 0x1dc   :  { %v419_v47 = vadd.f32 %v1023_v46, %v878_v31  ;;  %v410_v48 = vpop.f32.mrb[5].mxu1 }
 0x1dd   :  { %v411_v49 = vadd.f32 %v878_v31, %v410_v48  ;;  %v1024_v50 = vpop.f32.mrb[6].mxu1  ;;  %1049 = vmatprep.mubr.bf16.mxu0 %v473_v45 }
 0x1de   :  { %v422_v51 = vadd.f32 %v1024_v50, %v878_v31  ;;  %v413_v52 = vpop.f32.mrb[7].mxu1  ;;  %1050 = vmatmul.mubr.bf16.vlgmr.msra.gmra.mrb[16].mxu0 %v474_v44  ;;  %v463_v54 = vmax.f32 %v419_v47, 0.0 }
 0x1df   :  { %v414_v53 = vadd.f32 %v878_v31, %v413_v52  ;;  %v461_v56 = vmax.f32 %v411_v49, 0.0 }
 0x1e0   :  { %v464_v55 = vmax.f32 %v422_v51, 0.0 }
 0x1e1   :  { %v462_v57 = vmax.f32 %v414_v53, 0.0 }
 0x1e2   :  { %v476_v58 = vpack.c.bf16 %v464_v55, %v463_v54 }
 0x1e3   :  { %v475_v59 = vpack.c.bf16 %v462_v57, %v461_v56  ;;  %v1027_v60 = vpop.f32.mrb[8].mxu1 }
 0x1e4   :  { %v435_v61 = vadd.f32 %v1027_v60, %v878_v31  ;;  %v426_v62 = vpop.f32.mrb[9].mxu1 }
 0x1e5   :  { %v427_v63 = vadd.f32 %v878_v31, %v426_v62  ;;  %v1028_v0 = vpop.f32.mrb[10].mxu1  ;;  %1053 = vmatprep.mubr.bf16.mxu0 %v475_v59 }
 0x1e6   :  { %v438_v1 = vadd.f32 %v1028_v0, %v878_v31  ;;  %v429_v2 = vpop.f32.mrb[11].mxu1  ;;  %1054 = vmatmul.mubr.bf16.gmra.mrb[20].mxu0 %v476_v58  ;;  %v467_v4 = vmax.f32 %v435_v61, 0.0 }
 0x1e7   :  { %v430_v3 = vadd.f32 %v878_v31, %v429_v2  ;;  %v465_v6 = vmax.f32 %v427_v63, 0.0 }
 0x1e8   :  { %v468_v5 = vmax.f32 %v438_v1, 0.0 }
 0x1e9   :  { %v466_v7 = vmax.f32 %v430_v3, 0.0 }
 0x1ea   :  { %v478_v8 = vpack.c.bf16 %v468_v5, %v467_v4 }
 0x1eb   :  { %v477_v9 = vpack.c.bf16 %v466_v7, %v465_v6  ;;  %v1031_v10 = vpop.f32.mrb[12].mxu1 }
 0x1ec   :  { %v451_v11 = vadd.f32 %v1031_v10, %v878_v31  ;;  %v442_v12 = vpop.f32.mrb[13].mxu1 }
 0x1ed   :  { %v443_v13 = vadd.f32 %v878_v31, %v442_v12  ;;  %v1032_v14 = vpop.f32.mrb[14].mxu1  ;;  %1057 = vmatprep.mubr.bf16.mxu0 %v477_v9 }
 0x1ee   :  { %v454_v15 = vadd.f32 %v1032_v14, %v878_v31  ;;  %v445_v16 = vpop.f32.mrb[15].mxu1  ;;  %1058 = vmatmul.mubr.bf16.gmra.mrb[24].mxu0 %v478_v8  ;;  %v471_v18 = vmax.f32 %v451_v11, 0.0 }
 0x1ef   :  { %v446_v17 = vadd.f32 %v878_v31, %v445_v16  ;;  %v469_v20 = vmax.f32 %v443_v13, 0.0 }
 0x1f0   :  { %v472_v19 = vmax.f32 %v454_v15, 0.0 }
 0x1f1   :  { %v470_v21 = vmax.f32 %v446_v17, 0.0 }
 0x1f2   :  { %v480_v22 = vpack.c.bf16 %v472_v19, %v471_v18  ;;  %v896_v19 = vld [vmem:[%s1375_s8] ss:$0 sm:$0xff] }
 0x1f3   :  { %v479_v23 = vpack.c.bf16 %v470_v21, %v469_v20 }
 0x1f5   :  { %1061 = vmatprep.mubr.bf16.mxu0 %v479_v23 }
 0x1f6   :  { %1062 = vmatmul.mubr.bf16.gmra.mrb[28].mxu0 %v480_v22 }
 0x2b1   :  { %v1051_v27 = vpop.f32.mrb[16].mxu0 }
 0x2b2   :  { %v595_v28 = vadd.f32 %v1051_v27, %v887_v26  ;;  %v586_v29 = vpop.f32.mrb[17].mxu0 }
 0x2b3   :  { %v587_v30 = vadd.f32 %v887_v26, %v586_v29  ;;  %v1052_v31 = vpop.f32.mrb[18].mxu0 }
 0x2b4   :  { %v598_v32 = vadd.f32 %v1052_v31, %v887_v26  ;;  %v589_v33 = vpop.f32.mrb[19].mxu0  ;;  %v651_v35 = vmax.f32 %v595_v28, 0.0 }
 0x2b5   :  { %v590_v34 = vadd.f32 %v887_v26, %v589_v33  ;;  %v649_v37 = vmax.f32 %v587_v30, 0.0 }
 0x2b6   :  { %v652_v36 = vmax.f32 %v598_v32, 0.0 }
 0x2b7   :  { %v650_v38 = vmax.f32 %v590_v34, 0.0 }
 0x2b8   :  { %v666_v39 = vpack.c.bf16 %v652_v36, %v651_v35 }
 0x2b9   :  { %v665_v40 = vpack.c.bf16 %v650_v38, %v649_v37  ;;  %v1055_v41 = vpop.f32.mrb[20].mxu0 }
 0x2ba   :  { %v611_v42 = vadd.f32 %v1055_v41, %v887_v26  ;;  %v602_v43 = vpop.f32.mrb[21].mxu0 }
 0x2bb   :  { %v603_v44 = vadd.f32 %v887_v26, %v602_v43  ;;  %v1056_v45 = vpop.f32.mrb[22].mxu0  ;;  %1081 = vmatprep.mubr.bf16.mxu1 %v665_v40 }
 0x2bc   :  { %v614_v46 = vadd.f32 %v1056_v45, %v887_v26  ;;  %v605_v47 = vpop.f32.mrb[23].mxu0  ;;  %1082 = vmatmul.mubr.bf16.vlgmr.msra.gmra.mrb[16].mxu1 %v666_v39  ;;  %v655_v49 = vmax.f32 %v611_v42, 0.0 }
 0x2bd   :  { %v606_v48 = vadd.f32 %v887_v26, %v605_v47  ;;  %v653_v51 = vmax.f32 %v603_v44, 0.0 }
 0x2be   :  { %v656_v50 = vmax.f32 %v614_v46, 0.0 }
 0x2bf   :  { %v654_v52 = vmax.f32 %v606_v48, 0.0 }
 0x2c0   :  { %v668_v53 = vpack.c.bf16 %v656_v50, %v655_v49 }
 0x2c1   :  { %v667_v54 = vpack.c.bf16 %v654_v52, %v653_v51  ;;  %v1059_v55 = vpop.f32.mrb[24].mxu0 }
 0x2c2   :  { %v627_v56 = vadd.f32 %v1059_v55, %v887_v26  ;;  %v618_v57 = vpop.f32.mrb[25].mxu0 }
 0x2c3   :  { %v619_v58 = vadd.f32 %v887_v26, %v618_v57  ;;  %v1060_v59 = vpop.f32.mrb[26].mxu0  ;;  %1085 = vmatprep.mubr.bf16.mxu1 %v667_v54 }
 0x2c4   :  { %v630_v60 = vadd.f32 %v1060_v59, %v887_v26  ;;  %v621_v61 = vpop.f32.mrb[27].mxu0  ;;  %1086 = vmatmul.mubr.bf16.gmra.mrb[20].mxu1 %v668_v53  ;;  %v659_v63 = vmax.f32 %v627_v56, 0.0 }
 0x2c5   :  { %v622_v62 = vadd.f32 %v887_v26, %v621_v61  ;;  %v657_v1 = vmax.f32 %v619_v58, 0.0 }
 0x2c6   :  { %v660_v0 = vmax.f32 %v630_v60, 0.0 }
 0x2c7   :  { %v658_v2 = vmax.f32 %v622_v62, 0.0 }
 0x2c8   :  { %v670_v3 = vpack.c.bf16 %v660_v0, %v659_v63 }
 0x2c9   :  { %v669_v4 = vpack.c.bf16 %v658_v2, %v657_v1  ;;  %v1063_v5 = vpop.f32.mrb[28].mxu0 }
 0x2ca   :  { %v643_v6 = vadd.f32 %v1063_v5, %v887_v26  ;;  %v634_v7 = vpop.f32.mrb[29].mxu0 }
 0x2cb   :  { %v635_v8 = vadd.f32 %v887_v26, %v634_v7  ;;  %v1064_v9 = vpop.f32.mrb[30].mxu0  ;;  %1089 = vmatprep.mubr.bf16.mxu1 %v669_v4 }
 0x2cc   :  { %v646_v10 = vadd.f32 %v1064_v9, %v887_v26  ;;  %v637_v11 = vpop.f32.mrb[31].mxu0  ;;  %1090 = vmatmul.mubr.bf16.gmra.mrb[24].mxu1 %v670_v3  ;;  %v663_v13 = vmax.f32 %v643_v6, 0.0 }
 0x2cd   :  { %v638_v12 = vadd.f32 %v887_v26, %v637_v11  ;;  %v661_v15 = vmax.f32 %v635_v8, 0.0 }
 0x2ce   :  { %v664_v14 = vmax.f32 %v646_v10, 0.0 }
 0x2cf   :  { %v662_v16 = vmax.f32 %v638_v12, 0.0 }
 0x2d0   :  { %v672_v17 = vpack.c.bf16 %v664_v14, %v663_v13 }
 0x2d1   :  { %v671_v18 = vpack.c.bf16 %v662_v16, %v661_v15 }
 0x2d3   :  { %1093 = vmatprep.mubr.bf16.mxu1 %v671_v18 }
 0x2d4   :  { %1094 = vmatmul.mubr.bf16.gmra.mrb[28].mxu1 %v672_v17 }
 0x38f   :  { %v1083_v20 = vpop.f32.mrb[16].mxu1 }
 0x390   :  { %v787_v21 = vadd.f32 %v1083_v20, %v896_v19  ;;  %v778_v22 = vpop.f32.mrb[17].mxu1 }
 0x391   :  { %v779_v23 = vadd.f32 %v896_v19, %v778_v22  ;;  %v1084_v24 = vpop.f32.mrb[18].mxu1 }
 0x392   :  { %843 = vst [vmem:[%s1376_s9 + $0x10] sm:$0xff] %v787_v21  ;;  %v790_v25 = vadd.f32 %v1084_v24, %v896_v19  ;;  %v781_v26 = vpop.f32.mrb[19].mxu1 }
 0x393   :  { %841 = vst [vmem:[%s1376_s9] sm:$0xff] %v779_v23  ;;  %v782_v27 = vadd.f32 %v896_v19, %v781_v26 }
 0x394   :  { %844 = vst [vmem:[%s1376_s9 + $0x18] sm:$0xff] %v790_v25 }
 0x395   :  { %842 = vst [vmem:[%s1376_s9 + $0x8] sm:$0xff] %v782_v27 }
 0x397   :  { %v1087_v28 = vpop.f32.mrb[20].mxu1 }
 0x398   :  { %v803_v29 = vadd.f32 %v1087_v28, %v896_v19  ;;  %v794_v30 = vpop.f32.mrb[21].mxu1 }
 0x399   :  { %v795_v31 = vadd.f32 %v896_v19, %v794_v30  ;;  %v1088_v32 = vpop.f32.mrb[22].mxu1 }
 0x39a   :  { %847 = vst [vmem:[%s1376_s9 + $0x30] sm:$0xff] %v803_v29  ;;  %v806_v33 = vadd.f32 %v1088_v32, %v896_v19  ;;  %v797_v34 = vpop.f32.mrb[23].mxu1 }
 0x39b   :  { %845 = vst [vmem:[%s1376_s9 + $0x20] sm:$0xff] %v795_v31  ;;  %v798_v35 = vadd.f32 %v896_v19, %v797_v34 }
 0x39c   :  { %848 = vst [vmem:[%s1376_s9 + $0x38] sm:$0xff] %v806_v33 }
 0x39d   :  { %846 = vst [vmem:[%s1376_s9 + $0x28] sm:$0xff] %v798_v35 }
 0x39f   :  { %v1091_v36 = vpop.f32.mrb[24].mxu1 }
 0x3a0   :  { %v819_v37 = vadd.f32 %v1091_v36, %v896_v19  ;;  %v810_v38 = vpop.f32.mrb[25].mxu1 }
 0x3a1   :  { %v811_v39 = vadd.f32 %v896_v19, %v810_v38  ;;  %v1092_v40 = vpop.f32.mrb[26].mxu1 }
 0x3a2   :  { %851 = vst [vmem:[%s1376_s9 + $0x50] sm:$0xff] %v819_v37  ;;  %v822_v41 = vadd.f32 %v1092_v40, %v896_v19  ;;  %v813_v42 = vpop.f32.mrb[27].mxu1 }
 0x3a3   :  { %849 = vst [vmem:[%s1376_s9 + $0x40] sm:$0xff] %v811_v39  ;;  %v814_v43 = vadd.f32 %v896_v19, %v813_v42 }
 0x3a4   :  { %852 = vst [vmem:[%s1376_s9 + $0x58] sm:$0xff] %v822_v41 }
 0x3a5   :  { %850 = vst [vmem:[%s1376_s9 + $0x48] sm:$0xff] %v814_v43 }
 0x3a7   :  { %v1095_v44 = vpop.f32.mrb[28].mxu1 }
 0x3a8   :  { %v835_v45 = vadd.f32 %v1095_v44, %v896_v19  ;;  %v826_v46 = vpop.f32.mrb[29].mxu1 }
 0x3a9   :  { %v827_v47 = vadd.f32 %v896_v19, %v826_v46  ;;  %v1096_v48 = vpop.f32.mrb[30].mxu1 }
 0x3aa   :  { %855 = vst [vmem:[%s1376_s9 + $0x70] sm:$0xff] %v835_v45  ;;  %v838_v49 = vadd.f32 %v1096_v48, %v896_v19  ;;  %v829_v50 = vpop.f32.mrb[31].mxu1 }
 0x3ab   :  { %853 = vst [vmem:[%s1376_s9 + $0x60] sm:$0xff] %v827_v47  ;;  %v830_v51 = vadd.f32 %v896_v19, %v829_v50 }
 0x3ac   :  { %856 = vst [vmem:[%s1376_s9 + $0x78] sm:$0xff] %v838_v49 }
 0x3ad   :  { %854 = vst [vmem:[%s1376_s9 + $0x68] sm:$0xff] %v830_v51 }

</bundles_post_ra>
